<compile_context>
chip_gen: v7x
topology: tpu7x:2x2x1
jax: 0.10.0
libtpu: 0.0.40
codegen_flags: <defaults>
</compile_context>

<pallas_src>
import math
import functools

import jax
import jax.numpy as jnp
from jax import lax
from jax.experimental import pallas as pl
from jax.experimental.pallas import tpu as pltpu


def _attention_kernel(x_ref, wqa_ref, wqb_ref, wka_ref, wkb_ref, wv_ref,
                      wo_ref, cos_ref, ssin_ref, o_ref,
                      k_scr, v_scr, q_stage, o_stage, *,
                      n_heads, n_kv_heads, head_dim, block_q):
    S = x_ref.shape[0]              # padded sequence length
    hd = head_dim
    H = n_heads
    KVH = n_kv_heads
    n_rep = H // KVH
    KVHd = KVH * hd

    q_idx = pl.program_id(1)

    # ---- K/V path: computed once per batch element (first q block), kept in
    # VMEM scratch in bf16.  Rotated K is produced directly in the per-head
    # [real halves | imag halves] layout by the permuted weights -> one wide
    # store, no per-head concatenates.
    @pl.when(q_idx == 0)
    def _compute_kv():
        xf = x_ref[...]                                                       # (S, D) bf16
        xk_a = jnp.dot(xf, wka_ref[...], preferred_element_type=jnp.float32)  # (S, KVHd)
        xk_b = jnp.dot(xf, wkb_ref[...], preferred_element_type=jnp.float32)  # (S, KVHd)
        cos_k = cos_ref[:, :KVHd]                                             # (S, KVHd) f32
        ssin_k = ssin_ref[:, :KVHd]
        k_scr[...] = (xk_a * cos_k + xk_b * ssin_k).astype(jnp.bfloat16)
        v_scr[...] = jnp.dot(xf, wv_ref[...],
                             preferred_element_type=jnp.float32).astype(jnp.bfloat16)

    # ---- Q path for this q block (rows sliced from the resident refs).
    q0 = pl.multiple_of(q_idx * block_q, block_q)
    xb = x_ref[pl.ds(q0, block_q), :]                                         # (bq, D) bf16
    xq_a = jnp.dot(xb, wqa_ref[...], preferred_element_type=jnp.float32)      # (bq, HHd)
    xq_b = jnp.dot(xb, wqb_ref[...], preferred_element_type=jnp.float32)      # (bq, HHd)
    cos_q = cos_ref[pl.ds(q0, block_q), :]
    ssin_q = ssin_ref[pl.ds(q0, block_q), :]
    # Full-width rotary (f32 math), per-head [r|i] layout, one wide store.
    q_stage[...] = (xq_a * cos_q + xq_b * ssin_q).astype(jnp.bfloat16)

    # ---- Causal mask for this q block.
    row = q0 + lax.broadcasted_iota(jnp.int32, (block_q, S), 0)
    col = lax.broadcasted_iota(jnp.int32, (block_q, S), 1)
    causal = col <= row

    # ---- Per-head attention.  Slices are taken from VMEM refs (offset loads)
    # and each head's PV result lands directly in its o_stage column slice.
    for h in range(H):                       # small static head loop
        kvh = h // n_rep                     # repeat_kv without materializing
        q_h = q_stage[:, h * hd:(h + 1) * hd]      # (bq, hd)  bf16
        k_h = k_scr[:, kvh * hd:(kvh + 1) * hd]    # (S, hd)   bf16
        v_h = v_scr[:, kvh * hd:(kvh + 1) * hd]    # (S, hd)   bf16

        # Single K=head_dim contraction; 1/sqrt(head_dim) folded into wq.
        s = lax.dot_general(q_h, k_h, (((1,), (1,)), ((), ())),
                            preferred_element_type=jnp.float32)    # (bq, S)
        s = jnp.where(causal, s, -jnp.inf)

        m = jnp.max(s, axis=-1, keepdims=True)
        p = jnp.exp(s - m)
        denom = jnp.sum(p, axis=-1, keepdims=True)
        p = (p * pl.reciprocal(denom, approx=True)).astype(jnp.bfloat16)

        pv = jnp.dot(p, v_h, preferred_element_type=jnp.float32)   # (bq, hd)
        o_stage[:, h * hd:(h + 1) * hd] = pv.astype(jnp.bfloat16)

    # ---- One wide output projection.
    out = jnp.dot(o_stage[...], wo_ref[...], preferred_element_type=jnp.float32)
    o_ref[...] = out.astype(o_ref.dtype)


def attention_forward(x, wq, wk, wv, wo, freqs_cos, freqs_sin, *,
                      n_heads, n_kv_heads):
    B, S, D = x.shape
    head_dim = D // n_heads
    HHd = n_heads * head_dim
    KVHd = n_kv_heads * head_dim
    assert n_heads % n_kv_heads == 0 and head_dim % 2 == 0

    # ---- q tiling: one block covering S whenever it comfortably fits VMEM
    # (covers max_seq_len=256); longer sequences are padded to 512-row blocks.
    MAX_SINGLE_BLOCK = 1024
    if S <= MAX_SINGLE_BLOCK:
        block_q = S
    else:
        block_q = 512
    S_pad = ((S + block_q - 1) // block_q) * block_q
    n_qb = S_pad // block_q

    scale = 1.0 / math.sqrt(head_dim)

    # ---- Host-side column permutations: per head, A = [even cols | odd cols]
    # (-> [r|i] layout), B = [odd cols | even cols] (-> [i|r]).  With
    # COS = [cos|cos] and SGN_SIN = [-sin|+sin] tiled per head, the rotation is
    # q_rot = (x@Wa)*COS + (x@Wb)*SGN_SIN  with no in-kernel relayout.
    def _rot_perms(nh):
        base = jnp.arange(nh)[:, None] * head_dim
        even = jnp.arange(0, head_dim, 2)[None, :]
        odd = even + 1
        pa = jnp.concatenate([base + even, base + odd], axis=1).reshape(-1)
        pb = jnp.concatenate([base + odd, base + even], axis=1).reshape(-1)
        return pa, pb

    q_pa, q_pb = _rot_perms(n_heads)
    k_pa, k_pb = _rot_perms(n_kv_heads)

    wq_a = (wq.T[:, q_pa] * scale).astype(jnp.bfloat16)   # (D, HHd)
    wq_b = (wq.T[:, q_pb] * scale).astype(jnp.bfloat16)   # (D, HHd)
    wk_a = wk.T[:, k_pa].astype(jnp.bfloat16)             # (D, KVHd)
    wk_b = wk.T[:, k_pb].astype(jnp.bfloat16)             # (D, KVHd)
    wv_t = wv.T.astype(jnp.bfloat16)                      # (D, KVHd)
    wo_t = wo.T.astype(jnp.bfloat16)                      # (HHd, D)

    cos_head = jnp.concatenate([freqs_cos, freqs_cos], axis=-1).astype(jnp.float32)
    ssin_head = jnp.concatenate([-freqs_sin, freqs_sin], axis=-1).astype(jnp.float32)
    cos_tab = jnp.tile(cos_head, (1, n_heads))            # (S, HHd) f32
    ssin_tab = jnp.tile(ssin_head, (1, n_heads))          # (S, HHd) f32

    x_bf = x.astype(jnp.bfloat16)
    if S_pad != S:
        pad = S_pad - S
        x_bf = jnp.pad(x_bf, ((0, 0), (0, pad), (0, 0)))
        cos_tab = jnp.pad(cos_tab, ((0, pad), (0, 0)))
        ssin_tab = jnp.pad(ssin_tab, ((0, pad), (0, 0)))

    kernel = functools.partial(_attention_kernel, n_heads=n_heads,
                               n_kv_heads=n_kv_heads, head_dim=head_dim,
                               block_q=block_q)

    flops = int(B * (4 * S_pad * D * HHd            # q proj (two matmuls)
                     + 4 * S_pad * D * KVHd         # k proj (two matmuls)
                     + 2 * S_pad * D * KVHd         # v proj
                     + 4 * n_heads * S_pad * S_pad * head_dim   # scores + PV
                     + 2 * S_pad * HHd * D))        # wo proj
    transcendentals = int(B * n_heads * S_pad * S_pad)
    bytes_accessed = int(B * S_pad * D * 2
                         + B * S_pad * D * x.dtype.itemsize
                         + 2 * (2 * D * HHd + 3 * D * KVHd + HHd * D)
                         + 2 * S_pad * HHd * 4)

    out = pl.pallas_call(
        kernel,
        out_shape=jax.ShapeDtypeStruct((B, S_pad, D), x.dtype),
        grid=(B, n_qb),
        in_specs=[
            pl.BlockSpec((None, S_pad, D), lambda b, q: (b, 0, 0)),   # x (full rows)
            pl.BlockSpec((D, HHd), lambda b, q: (0, 0)),              # wq^T [r|i]
            pl.BlockSpec((D, HHd), lambda b, q: (0, 0)),              # wq^T [i|r]
            pl.BlockSpec((D, KVHd), lambda b, q: (0, 0)),             # wk^T [r|i]
            pl.BlockSpec((D, KVHd), lambda b, q: (0, 0)),             # wk^T [i|r]
            pl.BlockSpec((D, KVHd), lambda b, q: (0, 0)),             # wv^T
            pl.BlockSpec((HHd, D), lambda b, q: (0, 0)),              # wo^T
            pl.BlockSpec((S_pad, HHd), lambda b, q: (0, 0)),          # COS table
            pl.BlockSpec((S_pad, HHd), lambda b, q: (0, 0)),          # SGN_SIN table
        ],
        out_specs=pl.BlockSpec((None, block_q, D), lambda b, q: (b, q, 0)),
        scratch_shapes=[
            pltpu.VMEM((S_pad, KVHd), jnp.bfloat16),    # rotated K
            pltpu.VMEM((S_pad, KVHd), jnp.bfloat16),    # V
            pltpu.VMEM((block_q, HHd), jnp.bfloat16),   # rotated Q staging
            pltpu.VMEM((block_q, HHd), jnp.bfloat16),   # head-output staging
        ],
        compiler_params=pltpu.CompilerParams(
            dimension_semantics=("parallel", "arbitrary"),
            vmem_limit_bytes=48 * 1024 * 1024),
        cost_estimate=pl.CostEstimate(flops=flops,
                                      transcendentals=transcendentals,
                                      bytes_accessed=bytes_accessed),
    )(x_bf, wq_a, wq_b, wk_a, wk_b, wv_t, wo_t, cos_tab, ssin_tab)

    if S_pad != S:
        out = out[:, :S, :]
    return out


# ----------------------- pure-JAX reference (mirrors the PyTorch code) ------
def attention_reference(x, wq, wk, wv, wo, freqs_cos, freqs_sin,
                        n_heads, n_kv_heads):
    B, S, D = x.shape
    head_dim = D // n_heads
    n_rep = n_heads // n_kv_heads

    xq = (x @ wq.T).reshape(B, S, n_heads, head_dim)
    xk = (x @ wk.T).reshape(B, S, n_kv_heads, head_dim)
    xv = (x @ wv.T).reshape(B, S, n_kv_heads, head_dim)

    def rot(t):
        tr, ti = t[..., 0::2], t[..., 1::2]
        c = freqs_cos[None, :, None, :]
        s = freqs_sin[None, :, None, :]
        out_r = tr * c - ti * s
        out_i = tr * s + ti * c
        return jnp.stack([out_r, out_i], axis=-1).reshape(t.shape)

    xq, xk = rot(xq), rot(xk)
    if n_rep > 1:
        xk = jnp.repeat(xk, n_rep, axis=2)
        xv = jnp.repeat(xv, n_rep, axis=2)

    xq = xq.transpose(0, 2, 1, 3)
    xk = xk.transpose(0, 2, 1, 3)
    xv = xv.transpose(0, 2, 1, 3)

    scores = jnp.einsum('bhqd,bhkd->bhqk', xq, xk) / math.sqrt(head_dim)
    mask = jnp.tril(jnp.ones((S, S), dtype=bool))
    scores = jnp.where(mask[None, None], scores, -jnp.inf)
    p = jax.nn.softmax(scores.astype(jnp.float32), axis=-1).astype(xq.dtype)
    out = jnp.einsum('bhqk,bhkd->bhqd', p, xv)
    out = out.transpose(0, 2, 1, 3).reshape(B, S, D)
    return out @ wo.T


if __name__ == "__main__":
    # Small, ModelArgs-consistent shapes: dim=32, n_heads=4 (=> head_dim=8),
    # n_kv_heads=4 (matches default n_kv_heads == n_heads), batch=2, seq=8.
    B, S = 2, 8
    dim, n_heads, n_kv_heads = 32, 4, 4
    head_dim = dim // n_heads

    key = jax.random.PRNGKey(0)
    kx, kq, kk, kv, ko = jax.random.split(key, 5)
    wscale = 1.0 / math.sqrt(dim)
    x = jax.random.normal(kx, (B, S, dim), jnp.float32)
    wq = jax.random.normal(kq, (n_heads * head_dim, dim), jnp.float32) * wscale
    wk = jax.random.normal(kk, (n_kv_heads * head_dim, dim), jnp.float32) * wscale
    wv = jax.random.normal(kv, (n_kv_heads * head_dim, dim), jnp.float32) * wscale
    wo = jax.random.normal(ko, (dim, n_heads * head_dim), jnp.float32) * wscale

    # Frequencies per Tools.compute_fre_sin_and_cos (note: theta**(+j/dim) as
    # in the reference code), sliced to the sequence length.
    theta = 10000.0
    fre = (theta ** (jnp.arange(0, head_dim, 2, dtype=jnp.float32) / head_dim)
           ).reshape(1, head_dim // 2)
    token = jnp.arange(S, dtype=jnp.float32).reshape(-1, 1)
    fre = fre * token
    freqs_cos = jnp.cos(fre)        # (S, head_dim // 2)
    freqs_sin = jnp.sin(fre)

    out = attention_forward(x, wq, wk, wv, wo, freqs_cos, freqs_sin,
                            n_heads=n_heads, n_kv_heads=n_kv_heads)
    out = jax.block_until_ready(out)

    ref = attention_reference(x, wq, wk, wv, wo, freqs_cos, freqs_sin,
                              n_heads, n_kv_heads)
    assert out.shape == (B, S, dim)
    # Tolerance accounts for bf16 MXU inputs + approx reciprocal vs. f32 ref.
    assert jnp.allclose(out, ref, atol=3e-2, rtol=3e-2), (
        f"max abs err {jnp.max(jnp.abs(out - ref))}")

    print("KERNEL_OK")
</pallas_src>

<mosaic_0001>
module attributes {stable_mosaic.version = 11 : i64} {
  func.func @_attention_kernel(%arg0: i32, %arg1: i32, %arg2: memref<1x8x32xbf16, #tpu.memory_space<vmem>>, %arg3: memref<32x32xbf16, #tpu.memory_space<vmem>>, %arg4: memref<32x32xbf16, #tpu.memory_space<vmem>>, %arg5: memref<32x32xbf16, #tpu.memory_space<vmem>>, %arg6: memref<32x32xbf16, #tpu.memory_space<vmem>>, %arg7: memref<32x32xbf16, #tpu.memory_space<vmem>>, %arg8: memref<32x32xbf16, #tpu.memory_space<vmem>>, %arg9: memref<8x32xf32, #tpu.memory_space<vmem>>, %arg10: memref<8x32xf32, #tpu.memory_space<vmem>>, %arg11: memref<1x8x32xf32, #tpu.memory_space<vmem>>, %arg12: memref<8x32xbf16, #tpu.memory_space<vmem>>, %arg13: memref<8x32xbf16, #tpu.memory_space<vmem>>, %arg14: memref<8x32xbf16, #tpu.memory_space<vmem>>, %arg15: memref<8x32xbf16, #tpu.memory_space<vmem>>) attributes {dimension_semantics = [#tpu.dimension_semantics<parallel>, #tpu.dimension_semantics<arbitrary>], iteration_bounds = array<i64: 2, 1>, scalar_prefetch = 0 : i64, scratch_operands = 4 : i64, tpu.core_type = #tpu.core_type<tc>, window_params = [{transform_indices = @transform_0, window_bounds = array<i64: 1, 8, 32>}, {pipeline_mode = #tpu.pipeline_mode<synchronous>, transform_indices = @transform_1, window_bounds = array<i64: 32, 32>}, {pipeline_mode = #tpu.pipeline_mode<synchronous>, transform_indices = @transform_2, window_bounds = array<i64: 32, 32>}, {pipeline_mode = #tpu.pipeline_mode<synchronous>, transform_indices = @transform_3, window_bounds = array<i64: 32, 32>}, {pipeline_mode = #tpu.pipeline_mode<synchronous>, transform_indices = @transform_4, window_bounds = array<i64: 32, 32>}, {pipeline_mode = #tpu.pipeline_mode<synchronous>, transform_indices = @transform_5, window_bounds = array<i64: 32, 32>}, {pipeline_mode = #tpu.pipeline_mode<synchronous>, transform_indices = @transform_6, window_bounds = array<i64: 32, 32>}, {pipeline_mode = #tpu.pipeline_mode<synchronous>, transform_indices = @transform_7, window_bounds = array<i64: 8, 32>}, {pipeline_mode = #tpu.pipeline_mode<synchronous>, transform_indices = @transform_8, window_bounds = array<i64: 8, 32>}, {transform_indices = @transform_9, window_bounds = array<i64: 1, 8, 32>}]} {
    %c0_i32 = arith.constant 0 : i32
    %0 = arith.cmpi eq, %arg1, %c0_i32 : i32
    %1 = arith.extui %0 : i1 to i32
    %c0_i32_0 = arith.constant 0 : i32
    %2 = arith.cmpi ne, %1, %c0_i32_0 : i32
    scf.if %2 {
      %c0_68 = arith.constant 0 : index
      %c0_69 = arith.constant 0 : index
      %c0_70 = arith.constant 0 : index
      %112 = vector.load %arg2[%c0_68, %c0_69, %c0_70] : memref<1x8x32xbf16, #tpu.memory_space<vmem>>, vector<1x8x32xbf16>
      %113 = vector.shape_cast %112 : vector<1x8x32xbf16> to vector<8x32xbf16>
      %c0_71 = arith.constant 0 : index
      %c0_72 = arith.constant 0 : index
      %114 = vector.load %arg5[%c0_71, %c0_72] : memref<32x32xbf16, #tpu.memory_space<vmem>>, vector<32x32xbf16>
      %cst_73 = arith.constant dense<0.000000e+00> : vector<8x32xf32>
      %115 = tpu.matmul %113, %114, %cst_73 {dimension_numbers = #tpu.dot_dimension_numbers<[1], [0], [0], [1], [0, 0, 1, 1], [], []>} : vector<8x32xbf16>, vector<32x32xbf16>, vector<8x32xf32> -> vector<8x32xf32>
      %c0_74 = arith.constant 0 : index
      %c0_75 = arith.constant 0 : index
      %116 = vector.load %arg6[%c0_74, %c0_75] : memref<32x32xbf16, #tpu.memory_space<vmem>>, vector<32x32xbf16>
      %cst_76 = arith.constant dense<0.000000e+00> : vector<8x32xf32>
      %117 = tpu.matmul %113, %116, %cst_76 {dimension_numbers = #tpu.dot_dimension_numbers<[1], [0], [0], [1], [0, 0, 1, 1], [], []>} : vector<8x32xbf16>, vector<32x32xbf16>, vector<8x32xf32> -> vector<8x32xf32>
      %c0_77 = arith.constant 0 : index
      %c0_78 = arith.constant 0 : index
      %118 = vector.load %arg9[%c0_77, %c0_78] : memref<8x32xf32, #tpu.memory_space<vmem>>, vector<8x32xf32>
      %c0_79 = arith.constant 0 : index
      %c0_80 = arith.constant 0 : index
      %119 = vector.load %arg10[%c0_79, %c0_80] : memref<8x32xf32, #tpu.memory_space<vmem>>, vector<8x32xf32>
      %120 = arith.mulf %115, %118 : vector<8x32xf32>
      %121 = arith.mulf %117, %119 : vector<8x32xf32>
      %122 = arith.addf %120, %121 : vector<8x32xf32>
      %123 = arith.truncf %122 : vector<8x32xf32> to vector<8x32xbf16>
      %c0_81 = arith.constant 0 : index
      %c0_82 = arith.constant 0 : index
      %124 = vector.load %arg12[%c0_81, %c0_82] : memref<8x32xbf16, #tpu.memory_space<vmem>>, vector<8x32xbf16>
      tpu.vector_store %arg12[%c0_81, %c0_82], %123 {strides = array<i32>} : memref<8x32xbf16, #tpu.memory_space<vmem>>, vector<8x32xbf16>,
      %c0_83 = arith.constant 0 : index
      %c0_84 = arith.constant 0 : index
      %125 = vector.load %arg7[%c0_83, %c0_84] : memref<32x32xbf16, #tpu.memory_space<vmem>>, vector<32x32xbf16>
      %cst_85 = arith.constant dense<0.000000e+00> : vector<8x32xf32>
      %126 = tpu.matmul %113, %125, %cst_85 {dimension_numbers = #tpu.dot_dimension_numbers<[1], [0], [0], [1], [0, 0, 1, 1], [], []>} : vector<8x32xbf16>, vector<32x32xbf16>, vector<8x32xf32> -> vector<8x32xf32>
      %127 = arith.truncf %126 : vector<8x32xf32> to vector<8x32xbf16>
      %c0_86 = arith.constant 0 : index
      %c0_87 = arith.constant 0 : index
      %128 = vector.load %arg13[%c0_86, %c0_87] : memref<8x32xbf16, #tpu.memory_space<vmem>>, vector<8x32xbf16>
      tpu.vector_store %arg13[%c0_86, %c0_87], %127 {strides = array<i32>} : memref<8x32xbf16, #tpu.memory_space<vmem>>, vector<8x32xbf16>,
    } else {
    }
    %c8_i32 = arith.constant 8 : i32
    %3 = arith.muli %arg1, %c8_i32 : i32
    %4 = tpu.assume_multiple %3, 8 : i32
    %c0 = arith.constant 0 : index
    %5 = arith.index_cast %4 : i32 to index
    %c0_1 = arith.constant 0 : index
    %6 = vector.load %arg2[%c0, %5, %c0_1] : memref<1x8x32xbf16, #tpu.memory_space<vmem>>, vector<1x8x32xbf16>
    %7 = vector.shape_cast %6 : vector<1x8x32xbf16> to vector<8x32xbf16>
    %c0_2 = arith.constant 0 : index
    %c0_3 = arith.constant 0 : index
    %8 = vector.load %arg3[%c0_2, %c0_3] : memref<32x32xbf16, #tpu.memory_space<vmem>>, vector<32x32xbf16>
    %cst = arith.constant dense<0.000000e+00> : vector<8x32xf32>
    %9 = tpu.matmul %7, %8, %cst {dimension_numbers = #tpu.dot_dimension_numbers<[1], [0], [0], [1], [0, 0, 1, 1], [], []>} : vector<8x32xbf16>, vector<32x32xbf16>, vector<8x32xf32> -> vector<8x32xf32>
    %c0_4 = arith.constant 0 : index
    %c0_5 = arith.constant 0 : index
    %10 = vector.load %arg4[%c0_4, %c0_5] : memref<32x32xbf16, #tpu.memory_space<vmem>>, vector<32x32xbf16>
    %cst_6 = arith.constant dense<0.000000e+00> : vector<8x32xf32>
    %11 = tpu.matmul %7, %10, %cst_6 {dimension_numbers = #tpu.dot_dimension_numbers<[1], [0], [0], [1], [0, 0, 1, 1], [], []>} : vector<8x32xbf16>, vector<32x32xbf16>, vector<8x32xf32> -> vector<8x32xf32>
    %12 = arith.index_cast %4 : i32 to index
    %c0_7 = arith.constant 0 : index
    %13 = vector.load %arg9[%12, %c0_7] : memref<8x32xf32, #tpu.memory_space<vmem>>, vector<8x32xf32>
    %14 = arith.index_cast %4 : i32 to index
    %c0_8 = arith.constant 0 : index
    %15 = vector.load %arg10[%14, %c0_8] : memref<8x32xf32, #tpu.memory_space<vmem>>, vector<8x32xf32>
    %16 = arith.mulf %9, %13 : vector<8x32xf32>
    %17 = arith.mulf %11, %15 : vector<8x32xf32>
    %18 = arith.addf %16, %17 : vector<8x32xf32>
    %19 = arith.truncf %18 : vector<8x32xf32> to vector<8x32xbf16>
    %c0_9 = arith.constant 0 : index
    %c0_10 = arith.constant 0 : index
    %20 = vector.load %arg14[%c0_9, %c0_10] : memref<8x32xbf16, #tpu.memory_space<vmem>>, vector<8x32xbf16>
    tpu.vector_store %arg14[%c0_9, %c0_10], %19 {strides = array<i32>} : memref<8x32xbf16, #tpu.memory_space<vmem>>, vector<8x32xbf16>,
    %21 = tpu.iota {dimensions = array<i32: 0>} : vector<8x8xi32>
    %22 = vector.broadcast %4 : i32 to vector<8x8xi32>
    %23 = arith.addi %22, %21 : vector<8x8xi32>
    %24 = tpu.iota {dimensions = array<i32: 1>} : vector<8x8xi32>
    %25 = arith.cmpi sle, %24, %23 : vector<8x8xi32>
    %c0_11 = arith.constant 0 : index
    %c0_12 = arith.constant 0 : index
    %26 = vector.load %arg14[%c0_11, %c0_12] : memref<8x32xbf16, #tpu.memory_space<vmem>>, vector<8x8xbf16>
    %c0_13 = arith.constant 0 : index
    %c0_14 = arith.constant 0 : index
    %27 = vector.load %arg12[%c0_13, %c0_14] : memref<8x32xbf16, #tpu.memory_space<vmem>>, vector<8x8xbf16>
    %c0_15 = arith.constant 0 : index
    %c0_16 = arith.constant 0 : index
    %28 = vector.load %arg13[%c0_15, %c0_16] : memref<8x32xbf16, #tpu.memory_space<vmem>>, vector<8x8xbf16>
    %cst_17 = arith.constant dense<0.000000e+00> : vector<8x8xf32>
    %29 = tpu.matmul %26, %27, %cst_17 {dimension_numbers = #tpu.dot_dimension_numbers<[1], [1], [0], [0], [0, 0, 1, 0], [], []>} : vector<8x8xbf16>, vector<8x8xbf16>, vector<8x8xf32> -> vector<8x8xf32>
    %cst_18 = arith.constant 0xFF800000 : f32
    %30 = vector.broadcast %cst_18 : f32 to vector<8x8xf32>
    %31 = arith.select %25, %29, %30 : vector<8x8xi1>, vector<8x8xf32>
    %cst_19 = arith.constant dense<0xFF800000> : vector<8xf32>
    %32 = vector.multi_reduction <maximumf>, %31, %cst_19 [1] : vector<8x8xf32> to vector<8xf32>
    %33 = vector.shape_cast %32 : vector<8xf32> to vector<8x1xf32>
    %34 = vector.broadcast %33 : vector<8x1xf32> to vector<8x8xf32>
    %35 = arith.subf %31, %34 : vector<8x8xf32>
    %36 = math.exp %35 : vector<8x8xf32>
    %cst_20 = arith.constant dense<0.000000e+00> : vector<8xf32>
    %37 = vector.multi_reduction <add>, %36, %cst_20 [1] : vector<8x8xf32> to vector<8xf32>
    %38 = vector.shape_cast %37 : vector<8xf32> to vector<8x1xf32>
    %39 = tpu.reciprocal %38 {approx = true} : vector<8x1xf32> -> vector<8x1xf32>
    %40 = vector.broadcast %39 : vector<8x1xf32> to vector<8x8xf32>
    %41 = arith.mulf %36, %40 : vector<8x8xf32>
    %42 = arith.truncf %41 : vector<8x8xf32> to vector<8x8xbf16>
    %cst_21 = arith.constant dense<0.000000e+00> : vector<8x8xf32>
    %43 = tpu.matmul %42, %28, %cst_21 {dimension_numbers = #tpu.dot_dimension_numbers<[1], [0], [0], [1], [0, 0, 1, 1], [], []>} : vector<8x8xbf16>, vector<8x8xbf16>, vector<8x8xf32> -> vector<8x8xf32>
    %44 = arith.truncf %43 : vector<8x8xf32> to vector<8x8xbf16>
    %c0_22 = arith.constant 0 : index
    %c0_23 = arith.constant 0 : index
    %45 = vector.load %arg15[%c0_22, %c0_23] : memref<8x32xbf16, #tpu.memory_space<vmem>>, vector<8x8xbf16>
    tpu.vector_store %arg15[%c0_22, %c0_23], %44 {strides = array<i32>} : memref<8x32xbf16, #tpu.memory_space<vmem>>, vector<8x8xbf16>,
    %c0_24 = arith.constant 0 : index
    %c8 = arith.constant 8 : index
    %46 = vector.load %arg14[%c0_24, %c8] : memref<8x32xbf16, #tpu.memory_space<vmem>>, vector<8x8xbf16>
    %c0_25 = arith.constant 0 : index
    %c8_26 = arith.constant 8 : index
    %47 = vector.load %arg12[%c0_25, %c8_26] : memref<8x32xbf16, #tpu.memory_space<vmem>>, vector<8x8xbf16>
    %c0_27 = arith.constant 0 : index
    %c8_28 = arith.constant 8 : index
    %48 = vector.load %arg13[%c0_27, %c8_28] : memref<8x32xbf16, #tpu.memory_space<vmem>>, vector<8x8xbf16>
    %cst_29 = arith.constant dense<0.000000e+00> : vector<8x8xf32>
    %49 = tpu.matmul %46, %47, %cst_29 {dimension_numbers = #tpu.dot_dimension_numbers<[1], [1], [0], [0], [0, 0, 1, 0], [], []>} : vector<8x8xbf16>, vector<8x8xbf16>, vector<8x8xf32> -> vector<8x8xf32>
    %cst_30 = arith.constant 0xFF800000 : f32
    %50 = vector.broadcast %cst_30 : f32 to vector<8x8xf32>
    %51 = arith.select %25, %49, %50 : vector<8x8xi1>, vector<8x8xf32>
    %cst_31 = arith.constant dense<0xFF800000> : vector<8xf32>
    %52 = vector.multi_reduction <maximumf>, %51, %cst_31 [1] : vector<8x8xf32> to vector<8xf32>
    %53 = vector.shape_cast %52 : vector<8xf32> to vector<8x1xf32>
    %54 = vector.broadcast %53 : vector<8x1xf32> to vector<8x8xf32>
    %55 = arith.subf %51, %54 : vector<8x8xf32>
    %56 = math.exp %55 : vector<8x8xf32>
    %cst_32 = arith.constant dense<0.000000e+00> : vector<8xf32>
    %57 = vector.multi_reduction <add>, %56, %cst_32 [1] : vector<8x8xf32> to vector<8xf32>
    %58 = vector.shape_cast %57 : vector<8xf32> to vector<8x1xf32>
    %59 = tpu.reciprocal %58 {approx = true} : vector<8x1xf32> -> vector<8x1xf32>
    %60 = vector.broadcast %59 : vector<8x1xf32> to vector<8x8xf32>
    %61 = arith.mulf %56, %60 : vector<8x8xf32>
    %62 = arith.truncf %61 : vector<8x8xf32> to vector<8x8xbf16>
    %cst_33 = arith.constant dense<0.000000e+00> : vector<8x8xf32>
    %63 = tpu.matmul %62, %48, %cst_33 {dimension_numbers = #tpu.dot_dimension_numbers<[1], [0], [0], [1], [0, 0, 1, 1], [], []>} : vector<8x8xbf16>, vector<8x8xbf16>, vector<8x8xf32> -> vector<8x8xf32>
    %64 = arith.truncf %63 : vector<8x8xf32> to vector<8x8xbf16>
    %c0_34 = arith.constant 0 : index
    %c8_35 = arith.constant 8 : index
    %65 = vector.load %arg15[%c0_34, %c8_35] : memref<8x32xbf16, #tpu.memory_space<vmem>>, vector<8x8xbf16>
    tpu.vector_store %arg15[%c0_34, %c8_35], %64 {strides = array<i32>} : memref<8x32xbf16, #tpu.memory_space<vmem>>, vector<8x8xbf16>,
    %c0_36 = arith.constant 0 : index
    %c16 = arith.constant 16 : index
    %66 = vector.load %arg14[%c0_36, %c16] : memref<8x32xbf16, #tpu.memory_space<vmem>>, vector<8x8xbf16>
    %c0_37 = arith.constant 0 : index
    %c16_38 = arith.constant 16 : index
    %67 = vector.load %arg12[%c0_37, %c16_38] : memref<8x32xbf16, #tpu.memory_space<vmem>>, vector<8x8xbf16>
    %c0_39 = arith.constant 0 : index
    %c16_40 = arith.constant 16 : index
    %68 = vector.load %arg13[%c0_39, %c16_40] : memref<8x32xbf16, #tpu.memory_space<vmem>>, vector<8x8xbf16>
    %cst_41 = arith.constant dense<0.000000e+00> : vector<8x8xf32>
    %69 = tpu.matmul %66, %67, %cst_41 {dimension_numbers = #tpu.dot_dimension_numbers<[1], [1], [0], [0], [0, 0, 1, 0], [], []>} : vector<8x8xbf16>, vector<8x8xbf16>, vector<8x8xf32> -> vector<8x8xf32>
    %cst_42 = arith.constant 0xFF800000 : f32
    %70 = vector.broadcast %cst_42 : f32 to vector<8x8xf32>
    %71 = arith.select %25, %69, %70 : vector<8x8xi1>, vector<8x8xf32>
    %cst_43 = arith.constant dense<0xFF800000> : vector<8xf32>
    %72 = vector.multi_reduction <maximumf>, %71, %cst_43 [1] : vector<8x8xf32> to vector<8xf32>
    %73 = vector.shape_cast %72 : vector<8xf32> to vector<8x1xf32>
    %74 = vector.broadcast %73 : vector<8x1xf32> to vector<8x8xf32>
    %75 = arith.subf %71, %74 : vector<8x8xf32>
    %76 = math.exp %75 : vector<8x8xf32>
    %cst_44 = arith.constant dense<0.000000e+00> : vector<8xf32>
    %77 = vector.multi_reduction <add>, %76, %cst_44 [1] : vector<8x8xf32> to vector<8xf32>
    %78 = vector.shape_cast %77 : vector<8xf32> to vector<8x1xf32>
    %79 = tpu.reciprocal %78 {approx = true} : vector<8x1xf32> -> vector<8x1xf32>
    %80 = vector.broadcast %79 : vector<8x1xf32> to vector<8x8xf32>
    %81 = arith.mulf %76, %80 : vector<8x8xf32>
    %82 = arith.truncf %81 : vector<8x8xf32> to vector<8x8xbf16>
    %cst_45 = arith.constant dense<0.000000e+00> : vector<8x8xf32>
    %83 = tpu.matmul %82, %68, %cst_45 {dimension_numbers = #tpu.dot_dimension_numbers<[1], [0], [0], [1], [0, 0, 1, 1], [], []>} : vector<8x8xbf16>, vector<8x8xbf16>, vector<8x8xf32> -> vector<8x8xf32>
    %84 = arith.truncf %83 : vector<8x8xf32> to vector<8x8xbf16>
    %c0_46 = arith.constant 0 : index
    %c16_47 = arith.constant 16 : index
    %85 = vector.load %arg15[%c0_46, %c16_47] : memref<8x32xbf16, #tpu.memory_space<vmem>>, vector<8x8xbf16>
    tpu.vector_store %arg15[%c0_46, %c16_47], %84 {strides = array<i32>} : memref<8x32xbf16, #tpu.memory_space<vmem>>, vector<8x8xbf16>,
    %c0_48 = arith.constant 0 : index
    %c24 = arith.constant 24 : index
    %86 = vector.load %arg14[%c0_48, %c24] : memref<8x32xbf16, #tpu.memory_space<vmem>>, vector<8x8xbf16>
    %c0_49 = arith.constant 0 : index
    %c24_50 = arith.constant 24 : index
    %87 = vector.load %arg12[%c0_49, %c24_50] : memref<8x32xbf16, #tpu.memory_space<vmem>>, vector<8x8xbf16>
    %c0_51 = arith.constant 0 : index
    %c24_52 = arith.constant 24 : index
    %88 = vector.load %arg13[%c0_51, %c24_52] : memref<8x32xbf16, #tpu.memory_space<vmem>>, vector<8x8xbf16>
    %cst_53 = arith.constant dense<0.000000e+00> : vector<8x8xf32>
    %89 = tpu.matmul %86, %87, %cst_53 {dimension_numbers = #tpu.dot_dimension_numbers<[1], [1], [0], [0], [0, 0, 1, 0], [], []>} : vector<8x8xbf16>, vector<8x8xbf16>, vector<8x8xf32> -> vector<8x8xf32>
    %cst_54 = arith.constant 0xFF800000 : f32
    %90 = vector.broadcast %cst_54 : f32 to vector<8x8xf32>
    %91 = arith.select %25, %89, %90 : vector<8x8xi1>, vector<8x8xf32>
    %cst_55 = arith.constant dense<0xFF800000> : vector<8xf32>
    %92 = vector.multi_reduction <maximumf>, %91, %cst_55 [1] : vector<8x8xf32> to vector<8xf32>
    %93 = vector.shape_cast %92 : vector<8xf32> to vector<8x1xf32>
    %94 = vector.broadcast %93 : vector<8x1xf32> to vector<8x8xf32>
    %95 = arith.subf %91, %94 : vector<8x8xf32>
    %96 = math.exp %95 : vector<8x8xf32>
    %cst_56 = arith.constant dense<0.000000e+00> : vector<8xf32>
    %97 = vector.multi_reduction <add>, %96, %cst_56 [1] : vector<8x8xf32> to vector<8xf32>
    %98 = vector.shape_cast %97 : vector<8xf32> to vector<8x1xf32>
    %99 = tpu.reciprocal %98 {approx = true} : vector<8x1xf32> -> vector<8x1xf32>
    %100 = vector.broadcast %99 : vector<8x1xf32> to vector<8x8xf32>
    %101 = arith.mulf %96, %100 : vector<8x8xf32>
    %102 = arith.truncf %101 : vector<8x8xf32> to vector<8x8xbf16>
    %cst_57 = arith.constant dense<0.000000e+00> : vector<8x8xf32>
    %103 = tpu.matmul %102, %88, %cst_57 {dimension_numbers = #tpu.dot_dimension_numbers<[1], [0], [0], [1], [0, 0, 1, 1], [], []>} : vector<8x8xbf16>, vector<8x8xbf16>, vector<8x8xf32> -> vector<8x8xf32>
    %104 = arith.truncf %103 : vector<8x8xf32> to vector<8x8xbf16>
    %c0_58 = arith.constant 0 : index
    %c24_59 = arith.constant 24 : index
    %105 = vector.load %arg15[%c0_58, %c24_59] : memref<8x32xbf16, #tpu.memory_space<vmem>>, vector<8x8xbf16>
    tpu.vector_store %arg15[%c0_58, %c24_59], %104 {strides = array<i32>} : memref<8x32xbf16, #tpu.memory_space<vmem>>, vector<8x8xbf16>,
    %c0_60 = arith.constant 0 : index
    %c0_61 = arith.constant 0 : index
    %106 = vector.load %arg15[%c0_60, %c0_61] : memref<8x32xbf16, #tpu.memory_space<vmem>>, vector<8x32xbf16>
    %c0_62 = arith.constant 0 : index
    %c0_63 = arith.constant 0 : index
    %107 = vector.load %arg8[%c0_62, %c0_63] : memref<32x32xbf16, #tpu.memory_space<vmem>>, vector<32x32xbf16>
    %cst_64 = arith.constant dense<0.000000e+00> : vector<8x32xf32>
    %108 = tpu.matmul %106, %107, %cst_64 {dimension_numbers = #tpu.dot_dimension_numbers<[1], [0], [0], [1], [0, 0, 1, 1], [], []>} : vector<8x32xbf16>, vector<32x32xbf16>, vector<8x32xf32> -> vector<8x32xf32>
    %c0_65 = arith.constant 0 : index
    %c0_66 = arith.constant 0 : index
    %c0_67 = arith.constant 0 : index
    %109 = vector.load %arg11[%c0_65, %c0_66, %c0_67] : memref<1x8x32xf32, #tpu.memory_space<vmem>>, vector<1x8x32xf32>
    %110 = vector.shape_cast %109 : vector<1x8x32xf32> to vector<8x32xf32>
    %111 = vector.shape_cast %108 : vector<8x32xf32> to vector<1x8x32xf32>
    tpu.vector_store %arg11[%c0_65, %c0_66, %c0_67], %111 {strides = array<i32>} : memref<1x8x32xf32, #tpu.memory_space<vmem>>, vector<1x8x32xf32>,
    return
  }
  func.func @transform_0(%arg0: i32, %arg1: i32) -> (i32, i32, i32) {
    %c0_i32 = arith.constant 0 : i32
    %c0_i32_0 = arith.constant 0 : i32
    %c0_i32_1 = arith.constant 0 : i32
    return %arg0, %c0_i32, %c0_i32_0 : i32, i32, i32
  }
  func.func @transform_1(%arg0: i32, %arg1: i32) -> (i32, i32) {
    %c0_i32 = arith.constant 0 : i32
    %c0_i32_0 = arith.constant 0 : i32
    %c0_i32_1 = arith.constant 0 : i32
    return %c0_i32, %c0_i32_0 : i32, i32
  }
  func.func @transform_2(%arg0: i32, %arg1: i32) -> (i32, i32) {
    %c0_i32 = arith.constant 0 : i32
    %c0_i32_0 = arith.constant 0 : i32
    %c0_i32_1 = arith.constant 0 : i32
    return %c0_i32, %c0_i32_0 : i32, i32
  }
  func.func @transform_3(%arg0: i32, %arg1: i32) -> (i32, i32) {
    %c0_i32 = arith.constant 0 : i32
    %c0_i32_0 = arith.constant 0 : i32
    %c0_i32_1 = arith.constant 0 : i32
    return %c0_i32, %c0_i32_0 : i32, i32
  }
  func.func @transform_4(%arg0: i32, %arg1: i32) -> (i32, i32) {
    %c0_i32 = arith.constant 0 : i32
    %c0_i32_0 = arith.constant 0 : i32
    %c0_i32_1 = arith.constant 0 : i32
    return %c0_i32, %c0_i32_0 : i32, i32
  }
  func.func @transform_5(%arg0: i32, %arg1: i32) -> (i32, i32) {
    %c0_i32 = arith.constant 0 : i32
    %c0_i32_0 = arith.constant 0 : i32
    %c0_i32_1 = arith.constant 0 : i32
    return %c0_i32, %c0_i32_0 : i32, i32
  }
  func.func @transform_6(%arg0: i32, %arg1: i32) -> (i32, i32) {
    %c0_i32 = arith.constant 0 : i32
    %c0_i32_0 = arith.constant 0 : i32
    %c0_i32_1 = arith.constant 0 : i32
    return %c0_i32, %c0_i32_0 : i32, i32
  }
  func.func @transform_7(%arg0: i32, %arg1: i32) -> (i32, i32) {
    %c0_i32 = arith.constant 0 : i32
    %c0_i32_0 = arith.constant 0 : i32
    %c0_i32_1 = arith.constant 0 : i32
    return %c0_i32, %c0_i32_0 : i32, i32
  }
  func.func @transform_8(%arg0: i32, %arg1: i32) -> (i32, i32) {
    %c0_i32 = arith.constant 0 : i32
    %c0_i32_0 = arith.constant 0 : i32
    %c0_i32_1 = arith.constant 0 : i32
    return %c0_i32, %c0_i32_0 : i32, i32
  }
  func.func @transform_9(%arg0: i32, %arg1: i32) -> (i32, i32, i32) {
    %c0_i32 = arith.constant 0 : i32
    %c0_i32_0 = arith.constant 0 : i32
    return %arg0, %arg1, %c0_i32 : i32, i32, i32
  }
}

</mosaic_0001>

<bundles_post_ra>
// kernel: tpu_custom_call.1
= control target key start
LH: loop header
LB: loop body
LE: loop exit
PB: predicated region body
PF: predicated region fallthrough
CT: control target
= control target key end

     0   :  { %s2688_s0 = inlined_call_operand.hbm [shape: bf16[2,8,32], index: 0, kind: input, shape index: {}]   ;;  %s2689_s1 = inlined_call_operand.hbm [shape: bf16[32,32], index: 1, kind: input, shape index: {}]   ;;  %s2690_s2 = inlined_call_operand.hbm [shape: bf16[32,32], index: 2, kind: input, shape index: {}]   ;;  %s2691_s3 = inlined_call_operand.hbm [shape: bf16[32,32], index: 3, kind: input, shape index: {}]   ;;  %s2692_s4 = inlined_call_operand.hbm [shape: bf16[32,32], index: 4, kind: input, shape index: {}]   ;;  %s2693_s5 = inlined_call_operand.vmem [shape: bf16[32,32], index: 5, kind: input, shape index: {}]   ;;  %s2694_s6 = inlined_call_operand.hbm [shape: bf16[32,32], index: 6, kind: input, shape index: {}]   ;;  %s2695_s7 = inlined_call_operand.vmem [shape: f32[8,32], index: 7, kind: input, shape index: {}]   ;;  %s2696_s8 = inlined_call_operand.hbm [shape: f32[8,32], index: 8, kind: input, shape index: {}]   ;;  %s2697_s9 = inlined_call_operand.hbm [shape: f32[2,8,32], index: 9, kind: output, shape index: {}]  }
   0x1   :  { %2704 = sst [smem:[#allocation25_spill]] %s2689_s1 }
   0x2   :  { %2705 = sst [smem:[#allocation26_spill]] %s2695_s7 }
   0x3   :  { %2706 = sst [smem:[#allocation27_spill]] %s2697_s9 }
   0x4   :  { %14 = vsyncpa [#allocation7], 0 }
   0x5   :  { %16 = vsyncpa [#allocation7 + $0x1], 0 }
   0x6   :  { %17 = vsyncpa [#allocation10], 0 }
   0x7   :  { %18 = vsyncpa [#allocation13], 0 }
   0x8   :  { %19 = vsyncpa [#allocation16], 0 }
   0x9   :  { %20 = vsyncpa [#allocation8], 0 }
   0xa   :  { %22 = vsyncpa [#allocation8 + $0x1], 0  ;;  %s2229_s30 = smov 0   ;;  %s2231_s10 = smov 0  }
   0xb   :  { %s2233_s11 = smov 0   ;;  %s2235_s12 = smov 0  }
   0xc   :  { %s2237_s13 = smov 0   ;;  %s2239_s14 = smov 0  }
   0xd LB: > { %2707 = sst [smem:[#allocation24_spill]] %s2151_s12  ;;  %s2698_s15 = sadd.s32 4294967295, %s2159_s14   ;;  %s2159_s14 = sphi %s2239_s14, %s28_s14   ;;  %s2155_s13 = sphi %s2237_s13, %s2732_s13   ;;  %s2151_s12 = sphi %s2235_s12, %s2731_s12   ;;  %s2147_s11 = sphi %s2233_s11, %s2730_s11   ;;  %s2143_s10 = sphi %s2231_s10, %s2729_s10   ;;  %s2139_s30 = sphi %s2229_s30, %s2728_s30  }
   0xe   : > { %p1503_p0 = scmp.ge.s32.totalorder %s2159_s14, 1  ;;  %p2263_p1 = scmp.eq.s32.totalorder %s2698_s15, 0 }
   0xf   : > { %p267_p2 = scmp.lt.s32.totalorder %s2159_s14, 3  ;;  %s2161_s18 = smov [#allocation9]  }
  0x10   : > { %s2708_s16 = scalar_select %p2263_p1, 1, 0 }
  0x11   : > { %p2268_p3 = pnand %p1503_p0, %p267_p2  ;;  %s279_s19 = sshll.u32 %s2161_s18, 4  ;;  %s2272_s19 = int_to_ptr.vmem [resolvable:$true] %s279_s19 }
  0x12   : > { %s2162_s21 = smov [#allocation12]   ;;  %s2163_s23 = smov [#allocation15]  }
  0x13   : > { %s2709_s17 = scalar_select %p2268_p3, 1, 0 }
  0x14   : > { %p1725_p4 = pneg %p2268_p3  ;;  %s305_s22 = sshll.u32 %s2162_s21, 4  ;;  %s2283_s22 = int_to_ptr.vmem [resolvable:$true] %s305_s22 }
  0x15   : > { %s2285_s24 = sshll.u32 %s2163_s23, 4  ;;  %s2711_s1 = sld [smem:[#allocation25_spill]]  ;;  %s335_s24 = int_to_ptr.vmem [resolvable:$true] %s2285_s24 }
  0x16   : > { %p2279_p6 = pnand %p1725_p4, %p2263_p1 }
  0x18   : > { %p2295_p8 = pneg %p2279_p6 }
  0x1b   : > { %s1867_s27 = scalar_lea.hbm %s2711_s1, 256 }
  0x1c   : > { %p1868_p7 = scmp.ne.s32.totalorder %s2711_s1, %s1867_s27  ;;  %p1874_p11 = scmp.lt.u32.totalorder %s1867_s27, %s2711_s1 }
  0x1e   : > { %p1870_p9 = pnand %p2295_p8, %p1868_p7 }
  0x20   : > { %p1871_p10 = pneg %p1870_p9 }
  0x22   : > { %p1876_p12 = pnand %p1874_p11, %p1871_p10 }
  0x24   : > { %1879 = shalt.err (!%p1876_p12)
}
  0x25   : > { %s1880_s25 = scalar_lea.vmem %s2272_s19, 256  ;;  %p1888_p4 = scmp.lt.s32.totalorder %s2272_s19, %s2272_s19 }
  0x26   : > { %p1881_p13 = scmp.ne.s32.totalorder %s2272_s19, %s1880_s25  ;;  %p1889_p5 = scmp.lt.s32.totalorder %s1880_s25, %s1880_s25 }
  0x28   : > { %p1883_p0 = pnand %p1881_p13, %p2295_p8  ;;  %p1890_p7 = por %p1889_p5, %p1888_p4 }
  0x2a   : > { %p1884_p2 = pneg %p1883_p0 }
  0x2c   : > { %p1891_p9 = pnand %p1890_p7, %p1884_p2 }
  0x2e   : > { %1894 = shalt.err (!%p1891_p9)
}
  0x2f   : > { %s2164_s26 = smov 64   ;;  %s2165_s27 = smov 4  }
  0x30   : > { %1728 = dma.hbm_to_vmem [thread:$0]  (!%p2279_p6), %s2711_s1, 256, %s2272_s19, [#allocation10], %s2164_s26, %s2164_s26, %s2165_s27  }
  0x31   : > { %s1895_s25 = scalar_lea.hbm %s2691_s3, 256 }
  0x32   : > { %p1896_p5 = scmp.ne.s32.totalorder %s2691_s3, %s1895_s25  ;;  %p1902_p12 = scmp.lt.u32.totalorder %s1895_s25, %s2691_s3 }
  0x34   : > { %p1898_p10 = pnand %p1896_p5, %p2295_p8 }
  0x36   : > { %p1899_p11 = pneg %p1898_p10 }
  0x38   : > { %p1904_p13 = pnand %p1902_p12, %p1899_p11 }
  0x3a   : > { %1907 = shalt.err (!%p1904_p13)
}
  0x3b   : > { %s1908_s19 = scalar_lea.vmem %s2283_s22, 256  ;;  %p1916_p7 = scmp.lt.s32.totalorder %s2283_s22, %s2283_s22 }
  0x3c   : > { %p1909_p0 = scmp.ne.s32.totalorder %s2283_s22, %s1908_s19  ;;  %p1917_p9 = scmp.lt.s32.totalorder %s1908_s19, %s1908_s19 }
  0x3e   : > { %p1911_p2 = pnand %p1909_p0, %p2295_p8  ;;  %p1918_p5 = por %p1917_p9, %p1916_p7 }
  0x40   : > { %p1912_p4 = pneg %p1911_p2 }
  0x42   : > { %p1919_p10 = pnand %p1918_p5, %p1912_p4 }
  0x44   : > { %1922 = shalt.err (!%p1919_p10)
}
  0x45   : > { %1734 = dma.hbm_to_vmem [thread:$0]  (!%p2279_p6), %s2691_s3, 256, %s2283_s22, [#allocation13], %s2164_s26, %s2164_s26, %s2165_s27  }
  0x46   : > { %s1923_s28 = scalar_lea.hbm %s2694_s6, 256 }
  0x47   : > { %p1924_p11 = scmp.ne.s32.totalorder %s2694_s6, %s1923_s28  ;;  %p1930_p0 = scmp.lt.u32.totalorder %s1923_s28, %s2694_s6 }
  0x49   : > { %p1926_p12 = pnand %p1924_p11, %p2295_p8 }
  0x4b   : > { %p1927_p13 = pneg %p1926_p12 }
  0x4d   : > { %p1932_p2 = pnand %p1930_p0, %p1927_p13 }
  0x4f   : > { %1935 = shalt.err (!%p1932_p2)
}
  0x50   : > { %s1936_s19 = scalar_lea.vmem %s335_s24, 256  ;;  %p1944_p5 = scmp.lt.s32.totalorder %s335_s24, %s335_s24 }
  0x51   : > { %p1937_p4 = scmp.ne.s32.totalorder %s335_s24, %s1936_s19  ;;  %p1945_p10 = scmp.lt.s32.totalorder %s1936_s19, %s1936_s19 }
  0x53   : > { %p1939_p7 = pnand %p1937_p4, %p2295_p8  ;;  %p1946_p3 = por %p1945_p10, %p1944_p5 }
  0x55   : > { %p1940_p9 = pneg %p1939_p7 }
  0x57   : > { %p1947_p1 = pnand %p1946_p3, %p1940_p9 }
  0x59   : > { %1950 = shalt.err (!%p1947_p1)
}
  0x5a   : > { %1740 = dma.hbm_to_vmem [thread:$0]  (!%p2279_p6), %s2694_s6, 256, %s335_s24, [#allocation16], %s2164_s26, %s2164_s26, %s2165_s27  }
  0x5b   : > { %s2166_s9 = smov [#allocation11]   ;;  %s2167_s15 = smov [#allocation14]  }
  0x5c   : > { %s292_s12 = sshll.u32 %s2166_s9, 4  ;;  %s318_s28 = sshll.u32 %s2167_s15, 4  ;;  %s293_s12 = int_to_ptr.vmem [resolvable:$true] %s292_s12  ;;  %s319_s28 = int_to_ptr.vmem [resolvable:$true] %s318_s28 }
  0x5d   : > { %s1951_s23 = scalar_lea.hbm %s2690_s2, 256 }
  0x5e   : > { %p1952_p1 = scmp.ne.s32.totalorder %s2690_s2, %s1951_s23  ;;  %p1958_p12 = scmp.lt.u32.totalorder %s1951_s23, %s2690_s2 }
  0x60   : > { %p1954_p3 = pnand %p1952_p1, %p2295_p8 }
  0x62   : > { %p1955_p11 = pneg %p1954_p3 }
  0x64   : > { %p1960_p13 = pnand %p1958_p12, %p1955_p11 }
  0x66   : > { %1963 = shalt.err (!%p1960_p13)
}
  0x67   : > { %s1964_s24 = scalar_lea.vmem %s293_s12, 256  ;;  %p1972_p7 = scmp.lt.s32.totalorder %s293_s12, %s293_s12 }
  0x68   : > { %p1965_p0 = scmp.ne.s32.totalorder %s293_s12, %s1964_s24  ;;  %p1973_p9 = scmp.lt.s32.totalorder %s1964_s24, %s1964_s24 }
  0x6a   : > { %p1967_p2 = pnand %p1965_p0, %p2295_p8  ;;  %p1974_p5 = por %p1973_p9, %p1972_p7 }
  0x6c   : > { %p1968_p4 = pneg %p1967_p2 }
  0x6e   : > { %p1975_p10 = pnand %p1974_p5, %p1968_p4 }
  0x70   : > { %1978 = shalt.err (!%p1975_p10)
}
  0x71   : > { %1731 = dma.hbm_to_vmem [thread:$0]  (!%p2279_p6), %s2690_s2, 256, %s293_s12, [#allocation10], %s2164_s26, %s2164_s26, %s2165_s27  }
  0x72   : > { %s1979_s29 = scalar_lea.hbm %s2692_s4, 256 }
  0x73   : > { %p1980_p1 = scmp.ne.s32.totalorder %s2692_s4, %s1979_s29  ;;  %p1986_p12 = scmp.lt.u32.totalorder %s1979_s29, %s2692_s4 }
  0x75   : > { %p1982_p3 = pnand %p1980_p1, %p2295_p8 }
  0x77   : > { %p1983_p11 = pneg %p1982_p3 }
  0x79   : > { %p1988_p13 = pnand %p1986_p12, %p1983_p11 }
  0x7b   : > { %1991 = shalt.err (!%p1988_p13)
}
  0x7c   : > { %s1992_s22 = scalar_lea.vmem %s319_s28, 256  ;;  %p2000_p7 = scmp.lt.s32.totalorder %s319_s28, %s319_s28 }
  0x7d   : > { %p1993_p0 = scmp.ne.s32.totalorder %s319_s28, %s1992_s22  ;;  %p2001_p9 = scmp.lt.s32.totalorder %s1992_s22, %s1992_s22 }
  0x7f   : > { %p1995_p2 = pnand %p1993_p0, %p2295_p8  ;;  %p2002_p5 = por %p2001_p9, %p2000_p7 }
  0x81   : > { %p1996_p4 = pneg %p1995_p2 }
  0x83   : > { %p2003_p10 = pnand %p2002_p5, %p1996_p4 }
  0x85   : > { %2006 = shalt.err (!%p2003_p10)
}
  0x86   : > { %1737 = dma.hbm_to_vmem [thread:$0]  (!%p2279_p6), %s2692_s4, 256, %s319_s28, [#allocation13], %s2164_s26, %s2164_s26, %s2165_s27  }
  0x87   : > { %s2168_s1 = smov [#allocation17]   ;;  %s2007_s29 = scalar_lea.hbm %s2696_s8, 128 }
  0x88   : > { %s351_s7 = sshll.u32 %s2168_s1, 4  ;;  %p2008_p1 = scmp.ne.s32.totalorder %s2696_s8, %s2007_s29  ;;  %s352_s7 = int_to_ptr.vmem [resolvable:$true] %s351_s7 }
  0x89   : > { %p2014_p12 = scmp.lt.u32.totalorder %s2007_s29, %s2696_s8 }
  0x8a   : > { %p2010_p3 = pnand %p2008_p1, %p2295_p8 }
  0x8c   : > { %p2011_p11 = pneg %p2010_p3 }
  0x8e   : > { %p2016_p13 = pnand %p2014_p12, %p2011_p11 }
  0x90   : > { %2019 = shalt.err (!%p2016_p13)
}
  0x91   : > { %s2020_s26 = scalar_lea.vmem %s352_s7, 128  ;;  %p2028_p7 = scmp.lt.s32.totalorder %s352_s7, %s352_s7 }
  0x92   : > { %p2021_p0 = scmp.ne.s32.totalorder %s352_s7, %s2020_s26  ;;  %p2029_p9 = scmp.lt.s32.totalorder %s2020_s26, %s2020_s26 }
  0x94   : > { %p2023_p2 = pnand %p2021_p0, %p2295_p8  ;;  %p2030_p5 = por %p2029_p9, %p2028_p7 }
  0x96   : > { %p2024_p4 = pneg %p2023_p2 }
  0x98   : > { %p2031_p10 = pnand %p2030_p5, %p2024_p4 }
  0x9a   : > { %2034 = shalt.err (!%p2031_p10)
}
  0x9b   : > { %1743 = dma.hbm_to_vmem [thread:$0]  (!%p2279_p6), %s2696_s8, 128, %s352_s7, [#allocation16]  }
  0x9c   : > { %s1502_s18 = sadd.s32 4294967294, %s2159_s14   ;;  %s40_s22 = sadd.s32 1, %s2155_s13 }
  0x9d   : > { %p42_p8 = scmp.ge.s32.totalorder %s40_s22, 2  ;;  %s47_s20 = sadd.s32 1, %s2147_s11 }
  0x9e   : > { %p54_p1 = scmp.ne.s32.totalorder %s2147_s11, %s2143_s10  ;;  %p55_p3 = scmp.eq.s32.totalorder %s2159_s14, 0 }
  0x9f   : > { %s2734_s22 = smov (%p42_p8, %s40_s22), 0  ;;  %p60_p12 = scmp.ne.s32.totalorder %s2143_s10, %s2139_s30 }
  0xa0   : > { %p2435_p11 = por %p55_p3, %p54_p1  ;;  %s44_s24 = ssub.s32 %s2155_s13, %s2734_s22 }
  0xa1   : > { %s2714_s1 = sadd.s32 4294967295, %s2159_s14   ;;  %p45_p13 = scmp.eq.s32.totalorder %s44_s24, 0 }
  0xa2   : > { %p254_p6 = scmp.eq.s32.totalorder %s2714_s1, 1  ;;  %p2715_p0 = scmp.ne.s32.totalorder %s2708_s16, 0 }
  0xa3   : > { %p260_p7 = scmp.eq.s32.totalorder %s1502_s18, 1  ;;  %p1758_p5 = scmp.lt.s32.totalorder %s2159_s14, 2 }
  0xa4   : > { %p2447_p2 = por %p2715_p0, %p60_p12  ;;  %p2451_p4 = por %p254_p6, %p54_p1 }
  0xa5   : > { %s2456_s15 = scalar_select %p45_p13, %s2147_s11, %s47_s20  }
  0xa6   : > { %s2717_s9 = scalar_select %p2451_p4, 1, 0 }
  0xa7   : > { %p2458_p9 = por %p260_p7, %p60_p12  ;;  %s362_s21 = sand.u32 1, %s2147_s11  }
  0xa8   : > { %s1512_s23 = sshll.u32 %s2155_s13, 6  ;;  %s1511_s25 = sshll.u32 %s362_s21, 2 }
  0xa9   : > { %s2718_s29 = scalar_select %p2458_p9, 1, 0 }
  0xaa   : > { %s2468_s27 = scalar_lea.hbm %s2688_s0, %s1512_s23  ;;  %s366_s28 = scalar_lea.vmem [#allocation6], %s1511_s25 }
  0xab   : > { %s373_s18 = sshll.u32 %s366_s28, 4  ;;  %p2472_p10 = pnand %p1758_p5, %p2435_p11  ;;  %s2476_s18 = int_to_ptr.vmem [resolvable:$true] %s373_s18 }
  0xac   : > { %s363_s24 = scalar_lea.sflag [#allocation7], %s362_s21  ;;  %s2035_s1 = scalar_lea.hbm %s2468_s27, 64 }
  0xad   : > { %p2036_p8 = scmp.ne.s32.totalorder %s2468_s27, %s2035_s1  ;;  %p2037_p1 = pneg %p2472_p10 }
  0xae   : > { %s2040_s12 = scalar_lea.hbm %s2688_s0, 128  ;;  %p2041_p11 = scmp.lt.u32.totalorder %s2468_s27, %s2688_s0 }
  0xaf   : > { %p2038_p3 = pnand %p2037_p1, %p2036_p8  ;;  %p2042_p6 = scmp.lt.u32.totalorder %s2040_s12, %s2035_s1 }
  0xb0   : > { %p2044_p0 = scmp.lt.u32.totalorder %s2035_s1, %s2468_s27 }
  0xb1   : > { %p2039_p12 = pneg %p2038_p3  ;;  %p2043_p13 = por %p2042_p6, %p2041_p11 }
  0xb3   : > { %p2045_p7 = por %p2044_p0, %p2043_p13 }
  0xb5   : > { %p2046_p5 = pnand %p2045_p7, %p2039_p12 }
  0xb7   : > { %2049 = shalt.err (!%p2046_p5)
}
  0xb8   : > { %s2050_s21 = scalar_lea.vmem %s2476_s18, 64  ;;  %s2169_s28 = smov [#allocation6]  }
  0xb9   : > { %p2051_p8 = scmp.ne.s32.totalorder %s2476_s18, %s2050_s21  ;;  %s2055_s23 = sshll.u32 %s2169_s28, 4  ;;  %s2056_s23 = int_to_ptr.vmem [resolvable:$false] %s2055_s23 }
  0xba   : > { %s2057_s25 = scalar_lea.vmem %s2056_s23, 128  ;;  %p2058_p4 = scmp.lt.s32.totalorder %s2476_s18, %s2056_s23 }
  0xbb   : > { %p2053_p3 = pnand %p2051_p8, %p2037_p1  ;;  %p2059_p11 = scmp.lt.s32.totalorder %s2057_s25, %s2050_s21 }
  0xbd   : > { %p2054_p9 = pneg %p2053_p3  ;;  %p2060_p6 = por %p2059_p11, %p2058_p4 }
  0xbf   : > { %p2061_p13 = pnand %p2060_p6, %p2054_p9 }
  0xc1   : > { %2064 = shalt.err (!%p2061_p13)
}
  0xc2   : > { %1747 = dma.hbm_to_vmem [thread:$0]  (!%p2472_p10), %s2468_s27, 64, %s2476_s18, %s363_s24  }
  0xc3   : > { %p2720_p12 = scmp.ne.s32.totalorder %s2709_s17, 0 }
  0xc4   : > { %s2506_s1 = sand.u32 (!%p2720_p12), 1, %s2143_s10  }
  0xc5   : > { %382 = sbr.rel (%p2720_p12) target bundleno = 1691 (0x69b), region = 56  ;;  %s1514_s12 = sshll.u32 (!%p2720_p12), %s2506_s1, 2 }
  0xc6   : > { %s385_s19 = scalar_lea.sflag (!%p2720_p12), [#allocation7], %s2506_s1  ;;  %s2510_s26 = scalar_lea.vmem (!%p2720_p12), [#allocation6], %s1514_s12 }
  0xcc   : > { %2118 = dma.done.wait (%p2447_p2), %s385_s19, 64  }
  0xcd   : > { %2120 = vsyncadd (%p2447_p2), %s385_s19, 4294967232  ;;  %p2721_p4 = scmp.ne.s32.totalorder %s2708_s16, 0 }
  0xcf   : > { %2122 = dma.done.wait (%p2721_p4), [#allocation10], 512  }
  0xd0   : > { %2124 = vsyncadd (%p2721_p4), [#allocation10], 4294966784 }
  0xd1   : > { %2126 = dma.done.wait (%p2721_p4), [#allocation13], 512  }
  0xd2   : > { %2128 = vsyncadd (%p2721_p4), [#allocation13], 4294966784 }
  0xd3   : > { %2130 = dma.done.wait (%p2721_p4), [#allocation16], 384  }
  0xd4   : > { %2132 = vsyncadd (%p2721_p4), [#allocation16], 4294966912  ;;  %v2170_v0 = vmov 0.0   ;;  %vm2171_vm0 = vmmov 0   ;;  %v1830_v1 = vld [vmem:[#allocation12] sm:$0xff]   ;;  %v1831_v2 = vld [vmem:[#allocation14] sm:$0xff]  }
  0xd5   : > { %1601 = vmatprep.subr.bf16.mxu0 %v2170_v0  ;;  %1609 = vmatprep.subr.bf16.mxu1 %v2170_v0  ;;  %v1832_v3 = vld [vmem:[#allocation12 + $0x8] sm:$0xff]   ;;  %v1833_v4 = vld [vmem:[#allocation14 + $0x8] sm:$0xff]   ;;  %vm469_vm1 = vcmask 261120   ;;  %v1836_v7 = vld [vmem:[#allocation9] sm:$0xff]   ;;  %s2722_s24 = sld [smem:[#allocation26_spill]]  ;;  %vm575_vm2 = vcmask 257024  }
  0xd6   : > { %1605 = vmatprep.mubr.msk.bf16.mxu0 %vm2171_vm0, %v2170_v0  ;;  %1613 = vmatprep.mubr.msk.bf16.mxu1 %vm2171_vm0, %v2170_v0  ;;  %v452_v5 = vld [vmem:[%s2510_s26] sm:$0xf]  ;;  %v1835_v8 = vld [vmem:[%s2693_s5 + $0x8] sm:$0xff]   ;;  %v1838_v9 = vld [vmem:[#allocation9 + $0x8] sm:$0xff]   ;;  %vm777_vm3 = vcmask 64512   ;;  %vm840_vm4 = vcmask 1043456  }
  0xd7   : > { %1602 = vmatpush3.bf16.msra.mxu0 %v1830_v1  ;;  %1610 = vmatpush3.bf16.msra.mxu1 %v1831_v2  ;;  %v1834_v6 = vld [vmem:[%s2693_s5] sm:$0xff]   ;;  %v1837_v10 = vld [vmem:[#allocation11] sm:$0xff]   ;;  %s2172_s21 = smov 112   ;;  %s2173_s28 = smov 120   ;;  %v767_v1 = vlaneseq  ;;  %vm885_vm6 = vcmask 60416   ;;  %vm1017_vm7 = vcmask 126016  }
  0xd8   : > { %1603 = vmatprep.subr.bf16.mxu0 %v2170_v0  ;;  %1611 = vmatprep.subr.bf16.mxu1 %v2170_v0  ;;  %v640_v11 = vld [vmem:[%s2510_s26] sm:$0xf]  ;;  %v570_v14 = vld [vmem:[#allocation17] sm:$0xff]  ;;  %s2174_s23 = smov 104   ;;  %s2175_s25 = smov 8   ;;  %vm1149_vm8 = vcmask 191616  }
  0xd9   : > { %v1839_v12 = vld [vmem:[#allocation11 + $0x8] sm:$0xff]   ;;  %v768_v2 = vshrl.u32 %v767_v1, 7  ;;  %s2176_s12 = smov 16   ;;  %s2723_s19 = sld [smem:[#allocation24_spill]]  ;;  %vm1281_vm9 = vcmask 257216  }
  0xda   : > { %s2177_s26 = smov 24   ;;  %s1521_s16 = sshll.u32 %s2506_s1, 3 }
  0xdb   : > { %1604 = vmatpush3.bf16.msra.mxu0 %v1832_v3  ;;  %1612 = vmatpush3.bf16.msra.mxu1 %v1833_v4  ;;  %v569_v13 = vld [vmem:[%s2722_s24] sm:$0xff]  ;;  %v772_v3 = vand.u32 127, %v767_v1  ;;  %s446_s7 = scalar_lea.vmem [#allocation18], %s1521_s16  ;;  %s2724_s24 = sld [smem:[#allocation27_spill]] }
  0xdc   : > { %1617 = vmatprep.subr.bf16.mxu0 %v2170_v0  ;;  %1625 = vmatprep.subr.bf16.mxu1 %v2170_v0  ;;  %s1359_s27 = sshll.u32 %s446_s7, 4  ;;  %p2725_p9 = scmp.ne.s32.totalorder %s2717_s9, 0  ;;  %s2640_s27 = int_to_ptr.vmem [resolvable:$true] %s1359_s27 }
  0xdd   : > { %vm773_vm5 = vcmp.le.s32.totalorder %v772_v3, %v768_v2 }
  0xde   : > { %1606 = vmatmul.mubr.msk.bf16.vlgmr.msra.gmra.mrb[0].mxu0 %vm469_vm1, %v452_v5  ;;  %1614 = vmatmul.mubr.msk.bf16.vlgmr.msra.gmra.mrb[0].mxu1 %vm469_vm1, %v452_v5 }
  0xdf   : > { %1618 = vmatpush3.bf16.msra.mxu0 %v1834_v6  ;;  %1626 = vmatpush3.bf16.msra.mxu1 %v1836_v7  ;;  %s1561_s17 = sshll.u32 %s2723_s19, 7 }
  0xe0   : > { %1619 = vmatprep.subr.bf16.mxu0 %v2170_v0  ;;  %1621 = vmatprep.mubr.msk.bf16.mxu0 %vm2171_vm0, %v2170_v0 }
  0xe1   : > { %1627 = vmatprep.subr.bf16.mxu1 %v2170_v0  ;;  %1629 = vmatprep.mubr.msk.bf16.mxu1 %vm2171_vm0, %v2170_v0 }
  0xe3   : > { %1620 = vmatpush3.bf16.msra.mxu0 %v1835_v8  ;;  %1628 = vmatpush3.bf16.msra.mxu1 %v1838_v9 }
  0xe4   : > { %1633 = vmatprep.subr.bf16.mxu0 %v2170_v0  ;;  %1641 = vmatprep.subr.bf16.mxu1 %v2170_v0 }
  0xe6   : > { %1622 = vmatmul.mubr.msk.bf16.vlgmr.msra.gmra.mrb[4].mxu0 %vm469_vm1, %v452_v5  ;;  %1630 = vmatmul.mubr.msk.bf16.vlgmr.msra.gmra.mrb[4].mxu1 %vm469_vm1, %v640_v11 }
  0xe7   : > { %1634 = vmatpush3.bf16.msra.mxu0 %v1837_v10  ;;  %1637 = vmatprep.mubr.msk.bf16.mxu0 %vm2171_vm0, %v2170_v0 }
  0xe8   : > { %1635 = vmatprep.subr.bf16.mxu0 %v2170_v0  ;;  %1643 = vmatprep.mubr.msk.bf16.mxu1 %vm2171_vm0, %v2170_v0 }
  0xeb   : > { %1636 = vmatpush3.bf16.msra.mxu0 %v1839_v12 }
  0xec   : > { %1647 = vmatprep.subr.bf16.mxu0 %v2170_v0 }
  0xee   : > { %1638 = vmatmul.mubr.msk.bf16.vlgmr.msra.gmra.mrb[8].mxu0 %vm469_vm1, %v640_v11 }
  0xef   : > { %1649 = vmatprep.mubr.msk.bf16.mxu0 %vm2171_vm0, %v2170_v0 }
 0x1b1   : > { %v507_v15 = vpop.f32.mrb[0].mxu0  ;;  %v563_v17 = vpop.f32.mrb[0].mxu1 }
 0x1b2   : > { %v571_v16 = vmul.f32 %v569_v13, %v507_v15  ;;  %v1607_v18 = vpop.f32.mrb[1].mxu0  ;;  %v572_v19 = vmul.f32 %v570_v14, %v563_v17  ;;  %v1615_v21 = vpop.f32.mrb[1].mxu1 }
 0x1b3   : > { %v510_v20 = vpop.f32.mrb[2].mxu0  ;;  %v566_v23 = vpop.f32.mrb[2].mxu1 }
 0x1b4   : > { %v1608_v22 = vpop.f32.mrb[3].mxu0  ;;  %v573_v24 = vadd.f32 %v572_v19, %v571_v16  ;;  %v1616_v25 = vpop.f32.mrb[3].mxu1 }
 0x1b6   : > { %v574_v26 = vpack.c.bf16 %v573_v24, %v573_v24 }
 0x1b8   : > { %576 = vst.msk [vmem:[#allocation2] sm:$0xf] %vm575_vm2, %v574_v26 }
 0x1b9   : > { %v627_v27 = vpop.f32.mrb[4].mxu0  ;;  %v695_v30 = vpop.f32.mrb[4].mxu1 }
 0x1ba   : > { %v633_v28 = vpack.c.bf16 %v627_v27, %v627_v27  ;;  %v1623_v29 = vpop.f32.mrb[5].mxu0  ;;  %v1631_v32 = vpop.f32.mrb[5].mxu1  ;;  %v761_v36 = vmul.f32 %v695_v30, %v569_v13 }
 0x1bb   : > { %v630_v31 = vpop.f32.mrb[6].mxu0  ;;  %v698_v34 = vpop.f32.mrb[6].mxu1 }
 0x1bc   : > { %634 = vst.msk [vmem:[#allocation3] sm:$0xf] %vm575_vm2, %v633_v28  ;;  %v1624_v33 = vpop.f32.mrb[7].mxu0  ;;  %v1632_v35 = vpop.f32.mrb[7].mxu1 }
 0x1bf   : > { %v775_v37 = vld [vmem:[#allocation2] sm:$0xf] }
 0x1c0   : > { %v1840_v38 = vld [vmem:[#allocation2] ss:$0 sps:$4 sm:$0xff]   ;;  %v782_v40 = vsel %vm777_vm3, %v775_v37, 0 }
 0x1c1   : > { %v751_v39 = vpop.f32.mrb[8].mxu0  ;;  %v1841_v41 = vld [vmem:[#allocation2] ss:$0 sps:$4 sm:$0xff]   ;;  %1642 = vmatpush3.bf16.xpose.msra.mxu1 %v782_v40  ;;  %1030 = vrot.lane.b32.xlu1 %v1840_v38, %s2172_s21 }
 0x1c2   : > { %v762_v42 = vmul.f32 %v751_v39, %v570_v14  ;;  %v1639_v43 = vpop.f32.mrb[9].mxu0  ;;  %898 = vrot.lane.b32.xlu0 %v1841_v41, %s2173_s28  ;;  %1653 = vmatprep.subr.bf16.mxu1 %v2170_v0  ;;  %v1845_v54 = vld [vmem:[#allocation2] ss:$0 sps:$4 sm:$0xff]  }
 0x1c3   : > { %v754_v44 = vpop.f32.mrb[10].mxu0  ;;  %v776_v45 = vld [vmem:[#allocation3] sm:$0xf] }
 0x1c4   : > { %v763_v46 = vadd.f32 %v762_v42, %v761_v36  ;;  %v1640_v47 = vpop.f32.mrb[11].mxu0  ;;  %v842_v48 = vsel %vm840_vm4, %v776_v45, 0  ;;  %v1846_v33 = vld [vmem:[#allocation3] ss:$0 sps:$4 sm:$0xff]  }
 0x1c5   : > { %1648 = vmatpush3.bf16.msra.mxu0 %v842_v48 }
 0x1c6   : > { %v764_v49 = vpack.c.bf16 %v763_v46, %v763_v46  ;;  %1659 = vmatprep.subr.bf16.mxu0 %v2170_v0 }
 0x1c8   : > { %766 = vst.msk [vmem:[#allocation4] sm:$0xf] %vm575_vm2, %v764_v49  ;;  %v1847_v49 = vld [vmem:[#allocation3] ss:$0 sps:$4 sm:$0xff]  }
 0x1cf   : > { %v774_v50 = vld [vmem:[#allocation4] sm:$0xf] }
 0x1d0   : > { %v1842_v51 = vld [vmem:[#allocation4] ss:$0 sps:$4 sm:$0xff]   ;;  %1644 = vmatmul.mubr.msk.bf16.vlgmr.msra.gmra.mrb[8].mxu1 %vm777_vm3, %v774_v50 }
 0x1d1   : > { %v1843_v52 = vld [vmem:[#allocation4] ss:$0 sps:$4 sm:$0xff]   ;;  %1025 = vrot.lane.b32.xlu1 %v1842_v51, %s2172_s21  ;;  %1655 = vmatprep.mubr.msk.bf16.mxu1 %vm2171_vm0, %v2170_v0 }
 0x1d2   : > { %893 = vrot.lane.b32.xlu0 %v1843_v52, %s2173_s28  ;;  %v1844_v53 = vld [vmem:[#allocation4] ss:$0 sps:$4 sm:$0xff]  }
 0x1d5   : > { %1157 = vrot.lane.b32.xlu1 %v1844_v53, %s2174_s23  ;;  %v1848_v53 = vld [vmem:[#allocation3] ss:$0 sps:$4 sm:$0xff]  }
 0x1d6   : > { %1162 = vrot.lane.b32.xlu0 %v1845_v54, %s2174_s23 }
 0x233   : > { %v1031_v57 = vpop.permute.xlu1 %1030 }
 0x234   : > { %v899_v55 = vpop.permute.xlu0 %898  ;;  %v1036_v59 = vsel %vm777_vm3, %v1031_v57, 0 }
 0x235   : > { %v904_v56 = vsel %vm777_vm3, %v899_v55, 0 }
 0x236   : > { %1654 = vmatpush3.bf16.xpose.msra.mxu1 %v904_v56 }
 0x237   : > { %1665 = vmatprep.subr.bf16.mxu1 %v2170_v0 }
 0x243   : > { %v1026_v61 = vpop.permute.xlu1 %1025 }
 0x244   : > { %v894_v58 = vpop.permute.xlu0 %893 }
 0x245   : > { %1656 = vmatmul.mubr.msk.bf16.vlgmr.msra.gmra.mrb[12].mxu1 %vm777_vm3, %v894_v58 }
 0x246   : > { %1666 = vmatpush3.bf16.xpose.msra.mxu1 %v1036_v59  ;;  %1667 = vmatprep.mubr.msk.bf16.mxu1 %vm2171_vm0, %v2170_v0 }
 0x247   : > { %1677 = vmatprep.subr.bf16.mxu1 %v2170_v0  ;;  %v1158_v63 = vpop.permute.xlu1 %1157 }
 0x248   : > { %v1163_v60 = vpop.permute.xlu0 %1162 }
 0x249   : > { %v1168_v62 = vsel %vm777_vm3, %v1163_v60, 0 }
 0x24d   : > { %1668 = vmatmul.mubr.msk.bf16.vlgmr.msra.gmra.mrb[16].mxu1 %vm777_vm3, %v1026_v61 }
 0x24e   : > { %1678 = vmatpush3.bf16.xpose.msra.mxu1 %v1168_v62  ;;  %1679 = vmatprep.mubr.msk.bf16.mxu1 %vm2171_vm0, %v2170_v0 }
 0x24f   : > { %1689 = vmatprep.subr.bf16.mxu1 %v2170_v0 }
 0x255   : > { %1680 = vmatmul.mubr.msk.bf16.vlgmr.msra.gmra.mrb[20].mxu1 %vm777_vm3, %v1158_v63 }
 0x256   : > { %1693 = vmatprep.mubr.msk.bf16.mxu1 %vm2171_vm0, %v2170_v0 }
 0x2a3   : > { %v818_v4 = vpop.f32.mrb[8].mxu1 }
 0x2a4   : > { %v824_v5 = vsel %vm773_vm5, %v818_v4, -inf  ;;  %v1645_v6 = vpop.f32.mrb[9].mxu1 }
 0x2a5   : > { %v821_v7 = vpop.f32.mrb[10].mxu1  ;;  %v825_v8 = vsel %vm777_vm3, %v824_v5, -inf }
 0x2a6   : > { %826 = vmax.xlane.f32.xlu0 %v825_v8  ;;  %v1646_v9 = vpop.f32.mrb[11].mxu1 }
 0x318   : > { %v940_v10 = vpop.f32.mrb[12].mxu1 }
 0x319   : > { %v946_v11 = vsel %vm773_vm5, %v940_v10, -inf  ;;  %v1657_v12 = vpop.f32.mrb[13].mxu1 }
 0x31a   : > { %v943_v13 = vpop.f32.mrb[14].mxu1  ;;  %v947_v14 = vsel %vm777_vm3, %v946_v11, -inf }
 0x31b   : > { %948 = vmax.xlane.f32.xlu1 %v947_v14  ;;  %v1658_v15 = vpop.f32.mrb[15].mxu1 }
 0x320   : > { %v1072_v16 = vpop.f32.mrb[16].mxu1 }
 0x321   : > { %v1078_v17 = vsel %vm773_vm5, %v1072_v16, -inf  ;;  %v1669_v18 = vpop.f32.mrb[17].mxu1 }
 0x322   : > { %v1075_v19 = vpop.f32.mrb[18].mxu1  ;;  %v1079_v20 = vsel %vm777_vm3, %v1078_v17, -inf }
 0x323   : > { %1080 = vmax.xlane.f32.xlu0 %v1079_v20  ;;  %v1670_v21 = vpop.f32.mrb[19].mxu1  ;;  %v1849_v20 = vld [vmem:[#allocation15] sm:$0xff]  }
 0x324   : > { %1690 = vmatpush3.bf16.msra.mxu1 %v1849_v20 }
 0x325   : > { %1691 = vmatprep.subr.bf16.mxu1 %v2170_v0 }
 0x328   : > { %v1204_v22 = vpop.f32.mrb[20].mxu1 }
 0x329   : > { %v1210_v23 = vsel %vm773_vm5, %v1204_v22, -inf  ;;  %v1681_v24 = vpop.f32.mrb[21].mxu1  ;;  %v1850_v22 = vld [vmem:[#allocation15 + $0x8] sm:$0xff]  }
 0x32a   : > { %v1207_v25 = vpop.f32.mrb[22].mxu1  ;;  %v1211_v26 = vsel %vm777_vm3, %v1210_v23, -inf  ;;  %1692 = vmatpush3.bf16.msra.mxu1 %v1850_v22 }
 0x32b   : > { %1212 = vmax.xlane.f32.xlu0 %v1211_v26  ;;  %v1682_v27 = vpop.f32.mrb[23].mxu1 }
 0x333   : > { %v827_v28 = vpop.xlane.xlu0 %826 }
 0x334   : > { %v828_v29 = vsub.f32 %v824_v5, %v827_v28 }
 0x336   : > { %v829_v30 = vmul.f32 1.442695, %v828_v29 }
 0x338   : > { %1851 = vpow2.f32 %v829_v30 }
 0x342   : > { %v1852_v31 = vpop.eup %1851 }
 0x343   : > { %v831_v32 = vsel %vm777_vm3, %v1852_v31, 0.0 }
 0x344   : > { %832 = vadd.xlane.f32.xlu1 %v831_v32 }
 0x355   : > { %962 = vrot.lane.b32.xlu1 %v1846_v33, %s2173_s28  ;;  %s1345_s28 = scalar_lea.sflag [#allocation8], %s2506_s1 }
 0x3a8   : > { %v949_v34 = vpop.xlane.xlu1 %948 }
 0x3a9   : > { %v950_v35 = vsub.f32 %v946_v11, %v949_v34 }
 0x3ab   : > { %v951_v36 = vmul.f32 1.442695, %v950_v35 }
 0x3ad   : > { %1853 = vpow2.f32 %v951_v36 }
 0x3b0   : > { %v1081_v37 = vpop.xlane.xlu0 %1080 }
 0x3b1   : > { %v1082_v38 = vsub.f32 %v1078_v17, %v1081_v37 }
 0x3b3   : > { %v1083_v39 = vmul.f32 1.442695, %v1082_v38 }
 0x3b5   : > { %1855 = vpow2.f32 %v1083_v39 }
 0x3b7   : > { %v1854_v40 = vpop.eup %1853 }
 0x3b8   : > { %v1213_v41 = vpop.xlane.xlu0 %1212  ;;  %v953_v42 = vsel %vm777_vm3, %v1854_v40, 0.0 }
 0x3b9   : > { %v1214_v43 = vsub.f32 %v1210_v23, %v1213_v41  ;;  %954 = vadd.xlane.f32.xlu0 %v953_v42 }
 0x3bb   : > { %v1215_v44 = vmul.f32 1.442695, %v1214_v43 }
 0x3bd   : > { %1857 = vpow2.f32 %v1215_v44 }
 0x3bf   : > { %v1856_v45 = vpop.eup %1855 }
 0x3c0   : > { %v1085_v46 = vsel %vm777_vm3, %v1856_v45, 0.0 }
 0x3c1   : > { %1086 = vadd.xlane.f32.xlu1 %v1085_v46 }
 0x3c7   : > { %v1858_v47 = vpop.eup %1857 }
 0x3c8   : > { %v1217_v48 = vsel %vm777_vm3, %v1858_v47, 0.0 }
 0x3c9   : > { %1218 = vadd.xlane.f32.xlu0 %v1217_v48 }
 0x3d1   : > { %v833_v50 = vpop.xlane.xlu1 %832 }
 0x3d2   : > { %1859 = vrcp.f32 %v833_v50  ;;  %1226 = vrot.lane.b32.xlu1 %v1847_v49, %s2174_s23  ;;  %s2065_s23 = scalar_lea.vmem %s2640_s27, 128 }
 0x3d3   : > { %p2066_p2 = scmp.ne.s32.totalorder %s2640_s27, %s2065_s23 }
 0x3d5   : > { %v963_v54 = vpop.permute.xlu1 %962  ;;  %p2067_p10 = pnand %p2066_p2, %p2725_p9 }
 0x3d6   : > { %v968_v56 = vsel %vm840_vm4, %v963_v54, 0 }
 0x3d7   : > { %p2068_p1 = pneg %p2067_p10 }
 0x3dc   : > { %v1860_v51 = vpop.eup %1859 }
 0x3dd   : > { %v835_v52 = vmul.f32 %v1860_v51, %v1852_v31 }
 0x3df   : > { %1094 = vrot.lane.b32.xlu0 %v1848_v53, %s2172_s21  ;;  %v836_v55 = vpack.c.bf16 %v835_v52, %v835_v52  ;;  %s2638_s21 = scalar_lea.hbm %s2724_s24, %s1561_s17 }
 0x3e1   : > { %1650 = vmatmul.mubr.msk.bf16.vlgmr.msra.gmra.mrb[12].mxu0 %vm777_vm3, %v836_v55 }
 0x3e2   : > { %1660 = vmatpush3.bf16.msra.mxu0 %v968_v56  ;;  %1661 = vmatprep.mubr.msk.bf16.mxu0 %vm2171_vm0, %v2170_v0 }
 0x3e3   : > { %1671 = vmatprep.subr.bf16.mxu0 %v2170_v0 }
 0x446   : > { %v955_v57 = vpop.xlane.xlu0 %954 }
 0x447   : > { %1861 = vrcp.f32 %v955_v57 }
 0x44e   : > { %v1087_v58 = vpop.xlane.xlu1 %1086 }
 0x44f   : > { %1863 = vrcp.f32 %v1087_v58 }
 0x451   : > { %v1862_v59 = vpop.eup %1861 }
 0x452   : > { %v957_v60 = vmul.f32 %v1862_v59, %v1854_v40  ;;  %v1227_v4 = vpop.permute.xlu1 %1226 }
 0x453   : > { %v1232_v6 = vsel %vm840_vm4, %v1227_v4, 0 }
 0x454   : > { %v958_v61 = vpack.c.bf16 %v957_v60, %v957_v60 }
 0x456   : > { %1662 = vmatmul.mubr.msk.bf16.vlgmr.msra.gmra.mrb[16].mxu0 %vm777_vm3, %v958_v61  ;;  %v1219_v62 = vpop.xlane.xlu0 %1218 }
 0x457   : > { %1865 = vrcp.f32 %v1219_v62  ;;  %1673 = vmatprep.mubr.msk.bf16.mxu0 %vm2171_vm0, %v2170_v0 }
 0x459   : > { %v1864_v63 = vpop.eup %1863 }
 0x45a   : > { %v1089_v1 = vmul.f32 %v1864_v63, %v1856_v45  ;;  %v1095_v2 = vpop.permute.xlu0 %1094 }
 0x45b   : > { %v1100_v3 = vsel %vm840_vm4, %v1095_v2, 0 }
 0x45c   : > { %1672 = vmatpush3.bf16.msra.mxu0 %v1100_v3  ;;  %v1090_v5 = vpack.c.bf16 %v1089_v1, %v1089_v1 }
 0x45d   : > { %1683 = vmatprep.subr.bf16.mxu0 %v2170_v0 }
 0x45f   : > { %1674 = vmatmul.mubr.msk.bf16.vlgmr.msra.gmra.mrb[20].mxu0 %vm777_vm3, %v1090_v5 }
 0x460   : > { %1684 = vmatpush3.bf16.msra.mxu0 %v1232_v6  ;;  %1685 = vmatprep.mubr.msk.bf16.mxu0 %vm2171_vm0, %v2170_v0 }
 0x461   : > { %v1866_v7 = vpop.eup %1865 }
 0x462   : > { %v1221_v8 = vmul.f32 %v1866_v7, %v1858_v47 }
 0x464   : > { %v1222_v9 = vpack.c.bf16 %v1221_v8, %v1221_v8 }
 0x467   : > { %1686 = vmatmul.mubr.msk.bf16.vlgmr.msra.gmra.mrb[24].mxu0 %vm777_vm3, %v1222_v9 }
 0x4b4   : > { %v878_v10 = vpop.f32.mrb[12].mxu0 }
 0x4b5   : > { %v884_v11 = vpack.c.bf16 %v878_v10, %v878_v10  ;;  %v1651_v12 = vpop.f32.mrb[13].mxu0 }
 0x4b6   : > { %v881_v13 = vpop.f32.mrb[14].mxu0 }
 0x4b7   : > { %886 = vst.msk [vmem:[#allocation5] sm:$0xf] %vm885_vm6, %v884_v11  ;;  %v1652_v14 = vpop.f32.mrb[15].mxu0 }
 0x529   : > { %v1004_v15 = vpop.f32.mrb[16].mxu0 }
 0x52a   : > { %v1564_v16 = vpack.c.bf16 %v1004_v15, %v1004_v15  ;;  %v1663_v17 = vpop.f32.mrb[17].mxu0 }
 0x52b   : > { %v1007_v18 = vpop.f32.mrb[18].mxu0 }
 0x52c   : > { %1014 = vrot.lane.b32.xlu1 %v1564_v16, %s2175_s25  ;;  %v1664_v19 = vpop.f32.mrb[19].mxu0  ;;  %s2178_s25 = smov [#allocation18]  }
 0x532   : > { %v1136_v21 = vpop.f32.mrb[20].mxu0 }
 0x533   : > { %v1565_v23 = vpack.c.bf16 %v1136_v21, %v1136_v21  ;;  %v1675_v24 = vpop.f32.mrb[21].mxu0 }
 0x534   : > { %v1139_v25 = vpop.f32.mrb[22].mxu0 }
 0x535   : > { %1146 = vrot.lane.b32.xlu0 %v1565_v23, %s2176_s12  ;;  %v1676_v26 = vpop.f32.mrb[23].mxu0  ;;  %s2069_s12 = sshll.u32 %s2178_s25, 4  ;;  %s2070_s12 = int_to_ptr.vmem [resolvable:$false] %s2069_s12 }
 0x536   : > { %s2071_s19 = scalar_lea.vmem %s2070_s12, 256  ;;  %p2072_p0 = scmp.lt.s32.totalorder %s2640_s27, %s2070_s12 }
 0x537   : > { %p2073_p7 = scmp.lt.s32.totalorder %s2071_s19, %s2065_s23 }
 0x539   : > { %p2074_p5 = por %p2073_p7, %p2072_p0 }
 0x53a   : > { %v1268_v27 = vpop.f32.mrb[24].mxu0 }
 0x53b   : > { %v1566_v28 = vpack.c.bf16 %v1268_v27, %v1268_v27  ;;  %v1687_v29 = vpop.f32.mrb[25].mxu0  ;;  %p2075_p8 = pnand %p2074_p5, %p2068_p1 }
 0x53c   : > { %v1271_v30 = vpop.f32.mrb[26].mxu0 }
 0x53d   : > { %1278 = vrot.lane.b32.xlu1 %v1566_v28, %s2177_s26  ;;  %v1688_v31 = vpop.f32.mrb[27].mxu0 }
 0x59e   : > { %v1015_v32 = vpop.permute.xlu1 %1014 }
 0x59f   : > { %1018 = vst.msk [vmem:[#allocation5] sm:$0xf] %vm1017_vm7, %v1015_v32 }
 0x5a7   : > { %v1147_v33 = vpop.permute.xlu0 %1146 }
 0x5a8   : > { %1150 = vst.msk [vmem:[#allocation5] sm:$0xf] %vm1149_vm8, %v1147_v33 }
 0x5af   : > { %v1279_v0 = vpop.permute.xlu1 %1278 }
 0x5b0   : > { %1282 = vst.msk [vmem:[#allocation5] sm:$0xf] %vm1281_vm9, %v1279_v0 }
 0x5b7   : > { %v1283_v34 = vld [vmem:[#allocation5] sm:$0xf] }
 0x5b8   : > { %1694 = vmatmul.mubr.msk.bf16.vlgmr.msra.gmra.mrb[24].mxu1 %vm469_vm1, %v1283_v34 }
 0x68b   : > { %v1337_v35 = vpop.f32.mrb[24].mxu1 }
 0x68c   : > { %1343 = vst.msk [vmem:[%s446_s7] sm:$0xff] %vm469_vm1, %v1337_v35  ;;  %v1695_v36 = vpop.f32.mrb[25].mxu1 }
 0x68d   : > { %v1340_v37 = vpop.f32.mrb[26].mxu1 }
 0x68e   : > { %2078 = shalt.err (!%p2075_p8)
}
 0x68f   : > { %s2079_s1 = scalar_lea.hbm %s2638_s21, 128  ;;  %s2083_s17 = scalar_lea.hbm %s2724_s24, 256 }
 0x690   : > { %p2080_p3 = scmp.ne.s32.totalorder %s2638_s21, %s2079_s1  ;;  %p2084_p13 = scmp.lt.u32.totalorder %s2638_s21, %s2724_s24 }
 0x691   : > { %p2085_p12 = scmp.lt.u32.totalorder %s2083_s17, %s2079_s1  ;;  %p2087_p2 = scmp.lt.u32.totalorder %s2079_s1, %s2638_s21 }
 0x692   : > { %p2081_p11 = pnand %p2080_p3, %p2725_p9 }
 0x693   : > { %p2086_p4 = por %p2085_p12, %p2084_p13 }
 0x694   : > { %p2082_p6 = pneg %p2081_p11 }
 0x695   : > { %p2088_p10 = por %p2087_p2, %p2086_p4 }
 0x697   : > { %p2089_p1 = pnand %p2088_p10, %p2082_p6 }
 0x699   : > { %2092 = shalt.err (!%p2089_p1)
}
 0x69a   : > { %1723 = dma.vmem_to_hbm [thread:$0]  (%p2725_p9), %s2640_s27, 128, %s2638_s21, %s1345_s28   ;;  %v1696_v38 = vpop.f32.mrb[27].mxu1 }
 0x69b PF: > { %s1371_s20 = sand.u32 1, %s2139_s30   ;;  %p2726_p0 = scmp.ne.s32.totalorder %s2718_s29, 0 }
 0x69c   : > { %p2727_p7 = scmp.ge.s32.totalorder %s2159_s14, 2  ;;  %s1372_s23 = scalar_lea.sflag [#allocation8], %s1371_s20 }
 0x69e   : > { %p1749_p5 = pnand %p2727_p7, %p2726_p0 }
 0x6a0   : > { %2134 = dma.done.wait (!%p1749_p5), %s1372_s23, 128  }
 0x6a1   : > { %2136 = vsyncadd (!%p1749_p5), %s1372_s23, 4294967168  ;;  %s28_s14 = sadd.s32 1, %s2159_s14   ;;  %s2728_s30 = smov %s2143_s10 }
 0x6a2   : > { %p25_p8 = scmp.ge.s32.totalorder %s28_s14, 4   ;;  %s2729_s10 = smov %s2147_s11 }
 0x6a3   : > { %s2730_s11 = smov %s2456_s15  ;;  %s2731_s12 = smov %s2155_s13 }
 0x6a4   : > { %s2732_s13 = smov %s2734_s22  ;;  %27 = sbr.rel (!%p25_p8) target bundleno = 13 (0xd), region = 132 }
 0x6ab   :  { %1377 = vsyncpa [#allocation7], 1 }
 0x6ac   :  { %1379 = vsyncpa [#allocation7 + $0x1], 1 }
 0x6ad   :  { %1380 = vsyncpa [#allocation10], 1 }
 0x6ae   :  { %1381 = vsyncpa [#allocation13], 1 }
 0x6af   :  { %1382 = vsyncpa [#allocation16], 1 }
 0x6b0   :  { %1383 = vsyncpa [#allocation8], 1 }
 0x6b1   :  { %1385 = vsyncpa [#allocation8 + $0x1], 1 }

</bundles_post_ra>
